<compile_context>
chip_gen: v6e
topology: v6e:2x2x1
jax: 0.10.0
libtpu: 0.0.40
codegen_flags: <defaults>
</compile_context>

<pallas_src>
import functools

import jax
import jax.numpy as jnp
from jax.experimental import pallas as pl
from jax.experimental.pallas import tpu as pltpu

P_DROP = 0.3
H1, H2 = 256, 128
_LANE = 128
_SUBLANE = 8
# Conservative budget: v7x has 64 MiB physical VMEM per TensorCore.
_VMEM_BUDGET = 48 * 1024 * 1024


def _round_up(n, m):
    return ((n + m - 1) // m) * m


def mlp_kernel(x_ref, w1_ref, b1_ref, w2_ref, b2_ref, w3_ref, b3_ref, *rest,
               training):
    if training:
        m1_ref, m2_ref, m3_ref, o_ref = rest
    else:
        (o_ref,) = rest

    # fc1 -> ReLU -> dropout   (bf16 MXU operands, f32 accumulation)
    h = jnp.dot(x_ref[...].astype(jnp.bfloat16), w1_ref[...],
                preferred_element_type=jnp.float32) + b1_ref[...]
    h = jnp.maximum(h, 0.0)
    if training:
        h = h * m1_ref[...]          # mask already carries the 1/(1-p) scale

    # fc2 -> ReLU -> dropout
    h = jnp.dot(h.astype(jnp.bfloat16), w2_ref[...],
                preferred_element_type=jnp.float32) + b2_ref[...]
    h = jnp.maximum(h, 0.0)
    if training:
        h = h * m2_ref[...]

    # fc3 -> ReLU -> dropout
    h = jnp.dot(h.astype(jnp.bfloat16), w3_ref[...],
                preferred_element_type=jnp.float32) + b3_ref[...]
    h = jnp.maximum(h, 0.0)
    if training:
        h = h * m3_ref[...]

    o_ref[...] = h.astype(o_ref.dtype)


def _vmem_estimate(tm, in_dim, out_pad, training):
    """Rough VMEM bytes for one pipelined step (weights resident, tiles 2x)."""
    weights = (in_dim * H1 + H1 * H2 + H2 * out_pad) * 2      # bf16
    biases = (H1 + H2 + out_pad) * 4                          # f32
    resident = 2 * (weights + biases)                         # double-buffered
    x_tiles = 2 * tm * in_dim * 4
    o_tiles = 2 * tm * out_pad * 4
    m_tiles = (2 * tm * (H1 + H2 + out_pad) * 4) if training else 0
    intermediates = tm * (H1 + H2 + out_pad) * 4
    return resident + x_tiles + o_tiles + m_tiles + intermediates


def init_params(key, input_dim, output_dim):
    """f32 params in (in, out) layout (transpose of nn.Linear's (out, in))."""
    ks = jax.random.split(key, 6)

    def lin(kw, kb, fan_in, fan_out):
        bound = 1.0 / (fan_in ** 0.5)
        w = jax.random.uniform(kw, (fan_in, fan_out), jnp.float32, -bound, bound)
        b = jax.random.uniform(kb, (1, fan_out), jnp.float32, -bound, bound)
        return w, b

    w1, b1 = lin(ks[0], ks[1], input_dim, H1)
    w2, b2 = lin(ks[2], ks[3], H1, H2)
    w3, b3 = lin(ks[4], ks[5], H2, output_dim)
    return (w1, b1, w2, b2, w3, b3)


def prepare_params(params):
    """Cast weights to bf16 (MXU-friendly) and pad out_dim to a lane-dense
    multiple of 128 so output stores are unmasked; biases stay f32."""
    w1, b1, w2, b2, w3, b3 = params
    out_dim = w3.shape[1]
    out_pad = _round_up(out_dim, _LANE)
    if out_pad != out_dim:
        w3 = jnp.pad(w3, ((0, 0), (0, out_pad - out_dim)))
        b3 = jnp.pad(b3, ((0, 0), (0, out_pad - out_dim)))
    return (w1.astype(jnp.bfloat16), b1.astype(jnp.float32),
            w2.astype(jnp.bfloat16), b2.astype(jnp.float32),
            w3.astype(jnp.bfloat16), b3.astype(jnp.float32),
            out_dim)


def mlp_forward(x, prep, *, dropout_rng=None, tm=256):
    """Fused fc1->relu->drop->fc2->relu->drop->fc3->relu->drop.

    x: (B, input_dim) f32.  prep: output of prepare_params().
    dropout_rng=None -> eval mode (dropout == identity);
    dropout_rng=PRNGKey -> training mode (Bernoulli keep 0.7, scaled 1/0.7).
    """
    w1, b1, w2, b2, w3, b3, out_dim = prep
    B, in_dim = x.shape
    out_pad = w3.shape[1]
    training = dropout_rng is not None

    # Batch tile: as large as possible (amortizes ~0.35us/grid-step overhead and
    # fills MXU rows), shrunk to fit the v7x-safe VMEM budget.
    tm = max(_SUBLANE, min(tm, _round_up(B, _SUBLANE)))
    tm = _round_up(tm, _SUBLANE)
    while tm > _SUBLANE and _vmem_estimate(tm, in_dim, out_pad, training) > _VMEM_BUDGET:
        tm = _round_up(tm // 2, _SUBLANE)
    B_pad = _round_up(B, tm)
    if B_pad != B:
        x = jnp.pad(x, ((0, B_pad - B), (0, 0)))

    in_specs = [
        pl.BlockSpec((tm, in_dim), lambda i: (i, 0)),      # x tile
        pl.BlockSpec((in_dim, H1), lambda i: (0, 0)),      # w1 (resident)
        pl.BlockSpec((1, H1), lambda i: (0, 0)),           # b1
        pl.BlockSpec((H1, H2), lambda i: (0, 0)),          # w2
        pl.BlockSpec((1, H2), lambda i: (0, 0)),           # b2
        pl.BlockSpec((H2, out_pad), lambda i: (0, 0)),     # w3
        pl.BlockSpec((1, out_pad), lambda i: (0, 0)),      # b3
    ]
    args = [x, w1, b1, w2, b2, w3, b3]

    if training:
        k1, k2, k3 = jax.random.split(dropout_rng, 3)
        scale = 1.0 / (1.0 - P_DROP)

        def make_mask(k, n):
            keep = jax.random.bernoulli(k, 1.0 - P_DROP, (B_pad, n))
            return keep.astype(jnp.float32) * scale

        args += [make_mask(k1, H1), make_mask(k2, H2), make_mask(k3, out_pad)]
        in_specs += [
            pl.BlockSpec((tm, H1), lambda i: (i, 0)),
            pl.BlockSpec((tm, H2), lambda i: (i, 0)),
            pl.BlockSpec((tm, out_pad), lambda i: (i, 0)),
        ]

    vmem_limit = int(min(max(1.5 * _vmem_estimate(tm, in_dim, out_pad, training),
                             32 * 1024 * 1024), _VMEM_BUDGET))

    out = pl.pallas_call(
        functools.partial(mlp_kernel, training=training),
        out_shape=jax.ShapeDtypeStruct((B_pad, out_pad), jnp.float32),
        grid_spec=pltpu.PrefetchScalarGridSpec(
            num_scalar_prefetch=0,
            grid=(B_pad // tm,),
            in_specs=in_specs,
            out_specs=pl.BlockSpec((tm, out_pad), lambda i: (i, 0)),
        ),
        compiler_params=pltpu.CompilerParams(
            dimension_semantics=("parallel",),   # batch tiles are independent
            vmem_limit_bytes=vmem_limit,
        ),
    )(*args)

    return out[:B, :out_dim]


def mlp_reference_eval(x, params_f32):
    """Pure-JAX f32 reference for eval mode (dropout == identity)."""
    w1, b1, w2, b2, w3, b3 = params_f32
    h = jnp.maximum(x @ w1 + b1, 0.0)
    h = jnp.maximum(h @ w2 + b2, 0.0)
    h = jnp.maximum(h @ w3 + b3, 0.0)
    return h


if __name__ == "__main__":
    input_dim, output_dim = 32, 16
    batch = 8

    key = jax.random.PRNGKey(0)
    k_x, k_p, k_d = jax.random.split(key, 3)
    x = jax.random.normal(k_x, (batch, input_dim), jnp.float32)
    raw_params = init_params(k_p, input_dim, output_dim)
    prep = prepare_params(raw_params)

    # Eval mode (dropout = identity): deterministic, check vs f32 reference.
    # bf16 matmul operands -> loose tolerance vs the f32 reference.
    out_eval = jax.block_until_ready(mlp_forward(x, prep))
    ref = mlp_reference_eval(x, raw_params)
    assert out_eval.shape == (batch, output_dim)
    assert jnp.allclose(out_eval, ref, atol=2e-2, rtol=2e-2), "eval-mode mismatch"

    # Training mode (host-generated inverted-dropout masks) — exercise the path.
    out_train = jax.block_until_ready(mlp_forward(x, prep, dropout_rng=k_d))
    assert out_train.shape == (batch, output_dim)
    assert bool(jnp.all(jnp.isfinite(out_train)))
    assert bool(jnp.all(out_train >= 0.0))   # ReLU + masking keeps nonnegativity

    print("KERNEL_OK")
</pallas_src>

<mosaic_0001>
module attributes {stable_mosaic.version = 11 : i64} {
  func.func @mlp_kernel(%arg0: i32, %arg1: memref<8x32xf32, #tpu.memory_space<vmem>>, %arg2: memref<32x256xbf16, #tpu.memory_space<vmem>>, %arg3: memref<1x256xf32, #tpu.memory_space<vmem>>, %arg4: memref<256x128xbf16, #tpu.memory_space<vmem>>, %arg5: memref<1x128xf32, #tpu.memory_space<vmem>>, %arg6: memref<128x128xbf16, #tpu.memory_space<vmem>>, %arg7: memref<1x128xf32, #tpu.memory_space<vmem>>, %arg8: memref<8x128xf32, #tpu.memory_space<vmem>>) attributes {dimension_semantics = [#tpu.dimension_semantics<parallel>], iteration_bounds = array<i64: 1>, scalar_prefetch = 0 : i64, scratch_operands = 0 : i64, tpu.core_type = #tpu.core_type<tc>, window_params = [{transform_indices = @transform_0, window_bounds = array<i64: 8, 32>}, {pipeline_mode = #tpu.pipeline_mode<synchronous>, transform_indices = @transform_1, window_bounds = array<i64: 32, 256>}, {pipeline_mode = #tpu.pipeline_mode<synchronous>, transform_indices = @transform_2, window_bounds = array<i64: 1, 256>}, {pipeline_mode = #tpu.pipeline_mode<synchronous>, transform_indices = @transform_3, window_bounds = array<i64: 256, 128>}, {pipeline_mode = #tpu.pipeline_mode<synchronous>, transform_indices = @transform_4, window_bounds = array<i64: 1, 128>}, {pipeline_mode = #tpu.pipeline_mode<synchronous>, transform_indices = @transform_5, window_bounds = array<i64: 128, 128>}, {pipeline_mode = #tpu.pipeline_mode<synchronous>, transform_indices = @transform_6, window_bounds = array<i64: 1, 128>}, {transform_indices = @transform_7, window_bounds = array<i64: 8, 128>}]} {
    %c0 = arith.constant 0 : index
    %c0_0 = arith.constant 0 : index
    %0 = vector.load %arg1[%c0, %c0_0] : memref<8x32xf32, #tpu.memory_space<vmem>>, vector<8x32xf32>
    %1 = arith.truncf %0 : vector<8x32xf32> to vector<8x32xbf16>
    %c0_1 = arith.constant 0 : index
    %c0_2 = arith.constant 0 : index
    %2 = vector.load %arg2[%c0_1, %c0_2] : memref<32x256xbf16, #tpu.memory_space<vmem>>, vector<32x256xbf16>
    %cst = arith.constant dense<0.000000e+00> : vector<8x256xf32>
    %3 = tpu.matmul %1, %2, %cst {dimension_numbers = #tpu.dot_dimension_numbers<[1], [0], [0], [1], [0, 0, 1, 1], [], []>} : vector<8x32xbf16>, vector<32x256xbf16>, vector<8x256xf32> -> vector<8x256xf32>
    %c0_3 = arith.constant 0 : index
    %c0_4 = arith.constant 0 : index
    %4 = vector.load %arg3[%c0_3, %c0_4] : memref<1x256xf32, #tpu.memory_space<vmem>>, vector<1x256xf32>
    %5 = vector.broadcast %4 : vector<1x256xf32> to vector<8x256xf32>
    %6 = arith.addf %3, %5 : vector<8x256xf32>
    %cst_5 = arith.constant 0.000000e+00 : f32
    %7 = vector.broadcast %cst_5 : f32 to vector<8x256xf32>
    %8 = arith.maximumf %6, %7 : vector<8x256xf32>
    %9 = arith.truncf %8 : vector<8x256xf32> to vector<8x256xbf16>
    %c0_6 = arith.constant 0 : index
    %c0_7 = arith.constant 0 : index
    %10 = vector.load %arg4[%c0_6, %c0_7] : memref<256x128xbf16, #tpu.memory_space<vmem>>, vector<256x128xbf16>
    %cst_8 = arith.constant dense<0.000000e+00> : vector<8x128xf32>
    %11 = tpu.matmul %9, %10, %cst_8 {dimension_numbers = #tpu.dot_dimension_numbers<[1], [0], [0], [1], [0, 0, 1, 1], [], []>} : vector<8x256xbf16>, vector<256x128xbf16>, vector<8x128xf32> -> vector<8x128xf32>
    %c0_9 = arith.constant 0 : index
    %c0_10 = arith.constant 0 : index
    %12 = vector.load %arg5[%c0_9, %c0_10] : memref<1x128xf32, #tpu.memory_space<vmem>>, vector<1x128xf32>
    %13 = vector.broadcast %12 : vector<1x128xf32> to vector<8x128xf32>
    %14 = arith.addf %11, %13 : vector<8x128xf32>
    %cst_11 = arith.constant 0.000000e+00 : f32
    %15 = vector.broadcast %cst_11 : f32 to vector<8x128xf32>
    %16 = arith.maximumf %14, %15 : vector<8x128xf32>
    %17 = arith.truncf %16 : vector<8x128xf32> to vector<8x128xbf16>
    %c0_12 = arith.constant 0 : index
    %c0_13 = arith.constant 0 : index
    %18 = vector.load %arg6[%c0_12, %c0_13] : memref<128x128xbf16, #tpu.memory_space<vmem>>, vector<128x128xbf16>
    %cst_14 = arith.constant dense<0.000000e+00> : vector<8x128xf32>
    %19 = tpu.matmul %17, %18, %cst_14 {dimension_numbers = #tpu.dot_dimension_numbers<[1], [0], [0], [1], [0, 0, 1, 1], [], []>} : vector<8x128xbf16>, vector<128x128xbf16>, vector<8x128xf32> -> vector<8x128xf32>
    %c0_15 = arith.constant 0 : index
    %c0_16 = arith.constant 0 : index
    %20 = vector.load %arg7[%c0_15, %c0_16] : memref<1x128xf32, #tpu.memory_space<vmem>>, vector<1x128xf32>
    %21 = vector.broadcast %20 : vector<1x128xf32> to vector<8x128xf32>
    %22 = arith.addf %19, %21 : vector<8x128xf32>
    %cst_17 = arith.constant 0.000000e+00 : f32
    %23 = vector.broadcast %cst_17 : f32 to vector<8x128xf32>
    %24 = arith.maximumf %22, %23 : vector<8x128xf32>
    %c0_18 = arith.constant 0 : index
    %c0_19 = arith.constant 0 : index
    %25 = vector.load %arg8[%c0_18, %c0_19] : memref<8x128xf32, #tpu.memory_space<vmem>>, vector<8x128xf32>
    tpu.vector_store %arg8[%c0_18, %c0_19], %24 {strides = array<i32>} : memref<8x128xf32, #tpu.memory_space<vmem>>, vector<8x128xf32>,
    return
  }
  func.func @transform_0(%arg0: i32) -> (i32, i32) {
    %c0_i32 = arith.constant 0 : i32
    %c0_i32_0 = arith.constant 0 : i32
    return %arg0, %c0_i32 : i32, i32
  }
  func.func @transform_1(%arg0: i32) -> (i32, i32) {
    %c0_i32 = arith.constant 0 : i32
    %c0_i32_0 = arith.constant 0 : i32
    %c0_i32_1 = arith.constant 0 : i32
    return %c0_i32, %c0_i32_0 : i32, i32
  }
  func.func @transform_2(%arg0: i32) -> (i32, i32) {
    %c0_i32 = arith.constant 0 : i32
    %c0_i32_0 = arith.constant 0 : i32
    %c0_i32_1 = arith.constant 0 : i32
    return %c0_i32, %c0_i32_0 : i32, i32
  }
  func.func @transform_3(%arg0: i32) -> (i32, i32) {
    %c0_i32 = arith.constant 0 : i32
    %c0_i32_0 = arith.constant 0 : i32
    %c0_i32_1 = arith.constant 0 : i32
    return %c0_i32, %c0_i32_0 : i32, i32
  }
  func.func @transform_4(%arg0: i32) -> (i32, i32) {
    %c0_i32 = arith.constant 0 : i32
    %c0_i32_0 = arith.constant 0 : i32
    %c0_i32_1 = arith.constant 0 : i32
    return %c0_i32, %c0_i32_0 : i32, i32
  }
  func.func @transform_5(%arg0: i32) -> (i32, i32) {
    %c0_i32 = arith.constant 0 : i32
    %c0_i32_0 = arith.constant 0 : i32
    %c0_i32_1 = arith.constant 0 : i32
    return %c0_i32, %c0_i32_0 : i32, i32
  }
  func.func @transform_6(%arg0: i32) -> (i32, i32) {
    %c0_i32 = arith.constant 0 : i32
    %c0_i32_0 = arith.constant 0 : i32
    %c0_i32_1 = arith.constant 0 : i32
    return %c0_i32, %c0_i32_0 : i32, i32
  }
  func.func @transform_7(%arg0: i32) -> (i32, i32) {
    %c0_i32 = arith.constant 0 : i32
    %c0_i32_0 = arith.constant 0 : i32
    return %arg0, %c0_i32 : i32, i32
  }
}

</mosaic_0001>

<bundles_post_ra>
// kernel: tpu_custom_call.1
= control target key start
LH: loop header
LB: loop body
LE: loop exit
PB: predicated region body
PF: predicated region fallthrough
CT: control target
= control target key end

     0   :  { %12 = vsyncpa [#allocation3], 0  ;;  %s783_s0 = inlined_call_operand.hbm [shape: f32[8,32], index: 0, kind: input, shape index: {}]   ;;  %s784_s1 = inlined_call_operand.hbm [shape: bf16[32,256], index: 1, kind: input, shape index: {}]   ;;  %s785_s2 = inlined_call_operand.vmem [shape: f32[1,256], index: 2, kind: input, shape index: {}]   ;;  %s786_s3 = inlined_call_operand.hbm [shape: bf16[256,128], index: 3, kind: input, shape index: {}]   ;;  %s787_s4 = inlined_call_operand.vmem [shape: f32[1,128], index: 4, kind: input, shape index: {}]   ;;  %s788_s5 = inlined_call_operand.hbm [shape: bf16[128,128], index: 5, kind: input, shape index: {}]   ;;  %s789_s6 = inlined_call_operand.vmem [shape: f32[1,128], index: 6, kind: input, shape index: {}]   ;;  %s790_s7 = inlined_call_operand.hbm [shape: f32[8,128], index: 7, kind: output, shape index: {}]  }
   0x1   :  { %13 = vsyncpa [#allocation6], 0 }
   0x2   :  { %14 = vsyncpa [#allocation9], 0 }
   0x3   :  { %15 = vsyncpa [#allocation4], 0  ;;  %s707_s24 = smov [#allocation5]  }
   0x4   :  { %s31_s25 = sshll.u32 %s707_s24, 4  ;;  %s32_s25 = int_to_ptr.vmem [resolvable:$true] %s31_s25 }
   0x5   :  { %s607_s26 = scalar_lea.vmem %s32_s25, 512  ;;  %p612_p1 = scmp.lt.s32.totalorder %s32_s25, %s32_s25 }
   0x6   :  { %p608_p0 = scmp.ne.s32.totalorder %s32_s25, %s607_s26  ;;  %p613_p2 = scmp.lt.s32.totalorder %s607_s26, %s607_s26 }
   0x8   :  { %p614_p3 = por %p613_p2, %p612_p1 }
   0xa   :  { %p615_p4 = pnand %p614_p3, %p608_p0 }
   0xc   :  { %618 = shalt.err (!%p615_p4)
}
   0xd   :  { %s708_s27 = smov 128   ;;  %s709_s28 = smov 8  }
   0xe   :  { %37 = dma.hbm_to_vmem [thread:$0]  %s784_s1, 512, %s32_s25, [#allocation6], %s708_s27, %s708_s27, %s709_s28  }
   0xf   :  { %s710_s8 = smov [#allocation2]   ;;  %s711_s10 = smov [#allocation7]  }
  0x10   :  { %s22_s9 = sshll.u32 %s710_s8, 4  ;;  %s45_s11 = sshll.u32 %s711_s10, 4  ;;  %s23_s9 = int_to_ptr.vmem [resolvable:$true] %s22_s9  ;;  %s46_s11 = int_to_ptr.vmem [resolvable:$true] %s45_s11 }
  0x11   :  { %s627_s12 = scalar_lea.vmem %s23_s9, 128  ;;  %p632_p6 = scmp.lt.s32.totalorder %s23_s9, %s23_s9 }
  0x12   :  { %p628_p5 = scmp.ne.s32.totalorder %s23_s9, %s627_s12  ;;  %p633_p7 = scmp.lt.s32.totalorder %s627_s12, %s627_s12 }
  0x14   :  { %p634_p8 = por %p633_p7, %p632_p6 }
  0x16   :  { %p635_p9 = pnand %p634_p8, %p628_p5 }
  0x18   :  { %638 = shalt.err (!%p635_p9)
}
  0x19   :  { %25 = dma.hbm_to_vmem [thread:$0]  %s783_s0, 128, %s23_s9, [#allocation3]  }
  0x1a   :  { %s647_s15 = scalar_lea.vmem %s46_s11, 2048  ;;  %p652_p11 = scmp.lt.s32.totalorder %s46_s11, %s46_s11 }
  0x1b   :  { %p648_p10 = scmp.ne.s32.totalorder %s46_s11, %s647_s15  ;;  %p653_p12 = scmp.lt.s32.totalorder %s647_s15, %s647_s15 }
  0x1d   :  { %p654_p13 = por %p653_p12, %p652_p11 }
  0x1f   :  { %p655_p0 = pnand %p654_p13, %p648_p10 }
  0x21   :  { %658 = shalt.err (!%p655_p0)
}
  0x22   :  { %s712_s1 = smov 64   ;;  %s713_s16 = smov 4  }
  0x23   :  { %51 = dma.hbm_to_vmem [thread:$0]  %s786_s3, 2048, %s46_s11, [#allocation6], %s712_s1, %s712_s1, %s713_s16  }
  0x24   :  { %s714_s19 = smov [#allocation8]  }
  0x25   :  { %s59_s20 = sshll.u32 %s714_s19, 4  ;;  %s60_s20 = int_to_ptr.vmem [resolvable:$true] %s59_s20 }
  0x26   :  { %s667_s21 = scalar_lea.vmem %s60_s20, 1024  ;;  %p672_p2 = scmp.lt.s32.totalorder %s60_s20, %s60_s20 }
  0x27   :  { %p668_p1 = scmp.ne.s32.totalorder %s60_s20, %s667_s21  ;;  %p673_p3 = scmp.lt.s32.totalorder %s667_s21, %s667_s21 }
  0x29   :  { %p674_p4 = por %p673_p3, %p672_p2 }
  0x2b   :  { %p675_p5 = pnand %p674_p4, %p668_p1 }
  0x2d   :  { %678 = shalt.err (!%p675_p5)
}
  0x2e   :  { %65 = dma.hbm_to_vmem [thread:$0]  %s788_s5, 1024, %s60_s20, [#allocation9], %s712_s1, %s712_s1, %s713_s16  }
  0x2f   :  { %699 = dma.done.wait [#allocation3], 128  }
  0x30   :  { %700 = vsyncadd [#allocation3], 4294967168 }
  0x31   :  { %701 = dma.done.wait [#allocation6], 2560  }
  0x32   :  { %702 = vsyncadd [#allocation6], 4294964736 }
  0x33   :  { %703 = dma.done.wait [#allocation9], 1024  }
  0x34   :  { %704 = vsyncadd [#allocation9], 4294966272  ;;  %v715_v0 = vmov 0   ;;  %v569_v1 = vld [vmem:[#allocation5 + $0x14] ss:$8 sps:$4 sm:$0xff]   ;;  %vm119_vm0 = vcmask 261120   ;;  %v89_v29 = vlaneseq }
  0x35   :  { %155 = vmatprep.mubr.bf16.mxu0 %v715_v0  ;;  %v571_v2 = vld [vmem:[#allocation5 + $0x10] ss:$8 sps:$4 sm:$0xff]   ;;  %135 = vmatprep.subr.bf16.mxu0 %v569_v1  ;;  %v572_v3 = vld [vmem:[#allocation5 + $0x4] ss:$8 sps:$4 sm:$0xff]   ;;  %v574_v4 = vld [vmem:[#allocation5] ss:$8 sps:$4 sm:$0xff]  }
  0x36   :  { %v81_v5 = vld [vmem:[#allocation2] sm:$0xff]  ;;  %136 = vmatpush1.bf16.msra.mxu0 %v571_v2  ;;  %v577_v8 = vld [vmem:[#allocation7 + $0x70] sm:$0xff]   ;;  %v579_v11 = vld [vmem:[#allocation7 + $0x68] sm:$0xff]   ;;  %v716_v24 = vmov 0.0   ;;  %v90_v30 = vshrl.u32 %v89_v29, 7  ;;  %vm717_vm1 = vmmov 0  }
  0x37   :  { %v575_v6 = vld [vmem:[#allocation7 + $0x78] sm:$0xff]   ;;  %137 = vmatprep.subr.bf16.mxu0 %v572_v3  ;;  %v82_v9 = vpack.c.bf16 %v81_v5, %v81_v5  ;;  %v578_v10 = vld [vmem:[#allocation7 + $0x30] sm:$0xff]   ;;  %v580_v12 = vld [vmem:[#allocation7 + $0x28] sm:$0xff]   ;;  %s718_s26 = smov [#allocation10]  }
  0x38   :  { %v576_v7 = vld [vmem:[#allocation7 + $0x38] sm:$0xff]   ;;  %506 = vmatprep.subr.bf16.mxu1 %v575_v6  ;;  %v581_v13 = vld [vmem:[#allocation7 + $0x60] sm:$0xff]   ;;  %v585_v17 = vld [vmem:[#allocation7 + $0x50] sm:$0xff]   ;;  %v91_v31 = vsub.s32 0, %v90_v30  ;;  %v95_v33 = vsub.s32 1, %v90_v30  ;;  %s464_s27 = sshll.u32 %s718_s26, 4  ;;  %s465_s27 = int_to_ptr.vmem [resolvable:$true] %s464_s27 }
  0x39   :  { %507 = vmatpush3.bf16.msra.mxu1 %v576_v7  ;;  %v582_v14 = vld [vmem:[#allocation7 + $0x20] sm:$0xff]   ;;  %v583_v15 = vld [vmem:[#allocation7 + $0x58] sm:$0xff]   ;;  %v586_v18 = vld [vmem:[#allocation7 + $0x10] sm:$0xff]   ;;  %p684_p7 = scmp.lt.s32.totalorder %s465_s27, %s465_s27 }
  0x3a   :  { %138 = vmatpush1.bf16.msra.mxu0 %v574_v4  ;;  %508 = vmatprep.subr.bf16.mxu1 %v577_v8  ;;  %v584_v16 = vld [vmem:[#allocation7 + $0x18] sm:$0xff]   ;;  %v587_v19 = vld [vmem:[#allocation7 + $0x48] sm:$0xff]   ;;  %v589_v21 = vld [vmem:[#allocation7 + $0x40] sm:$0xff]  }
  0x3b   :  { %v588_v20 = vld [vmem:[#allocation7 + $0x8] sm:$0xff]   ;;  %v590_v22 = vld [vmem:[#allocation7] sm:$0xff]   ;;  %v591_v23 = vld [vmem:[#allocation8 + $0x38] sm:$0xff]   ;;  %537 = vmatprep.subr.bf16.mxu0 %v716_v24 }
  0x3c   :  { %v592_v25 = vld [vmem:[#allocation8 + $0x30] sm:$0xff]   ;;  %v593_v26 = vld [vmem:[#allocation8 + $0x28] sm:$0xff]   ;;  %v594_v27 = vld [vmem:[#allocation8 + $0x20] sm:$0xff]  }
  0x3d   :  { %479 = vmatmul.mubr.msk.bf16.vlgmr.msra.gmra.mxu0 %vm119_vm0, %v82_v9  ;;  %509 = vmatpush3.bf16.msra.mxu1 %v578_v10  ;;  %v595_v28 = vld [vmem:[#allocation8 + $0x18] sm:$0xff]   ;;  %v596_v46 = vld [vmem:[#allocation8 + $0x10] sm:$0xff]   ;;  %v597_v47 = vld [vmem:[#allocation8 + $0x8] sm:$0xff]  }
  0x3e   :  { %510 = vmatprep.subr.bf16.mxu1 %v579_v11  ;;  %538 = vmatpush3.bf16.msra.mxu0 %v591_v23  ;;  %v87_v32 = vld [vmem:[%s785_s2] sm:$0x3]  ;;  %v598_v48 = vld [vmem:[#allocation8] sm:$0xff]  }
  0x3f   :  { %539 = vmatprep.subr.bf16.mxu0 %v716_v24  ;;  %v92_v34 = vrot.slane %v87_v32, %v91_v31  ;;  %v96_v35 = vrot.slane %v87_v32, %v95_v33  ;;  %553 = vmatprep.mubr.msk.bf16.mxu0 %vm717_vm1, %v716_v24  ;;  %v480_v50 = vld [vmem:[%s787_s4] ss:$0 sm:$0xff]  ;;  %s679_s4 = scalar_lea.vmem %s465_s27, 128 }
  0x40   :  { %v497_v58 = vld [vmem:[%s789_s6] ss:$0 sm:$0xff]  ;;  %p680_p6 = scmp.ne.s32.totalorder %s465_s27, %s679_s4  ;;  %p685_p8 = scmp.lt.s32.totalorder %s679_s4, %s679_s4 }
  0x41   :  { %511 = vmatpush3.bf16.msra.mxu1 %v580_v12 }
  0x42   :  { %512 = vmatprep.subr.bf16.mxu1 %v581_v13  ;;  %540 = vmatpush3.bf16.msra.mxu0 %v592_v25  ;;  %p686_p9 = por %p685_p8, %p684_p7 }
  0x43   :  { %541 = vmatprep.subr.bf16.mxu0 %v716_v24 }
  0x44   :  { %p687_p10 = pnand %p686_p9, %p680_p6 }
  0x45   :  { %513 = vmatpush3.bf16.msra.mxu1 %v582_v14 }
  0x46   :  { %514 = vmatprep.subr.bf16.mxu1 %v583_v15  ;;  %542 = vmatpush3.bf16.msra.mxu0 %v593_v26 }
  0x47   :  { %543 = vmatprep.subr.bf16.mxu0 %v716_v24 }
  0x49   :  { %515 = vmatpush3.bf16.msra.mxu1 %v584_v16 }
  0x4a   :  { %516 = vmatprep.subr.bf16.mxu1 %v585_v17  ;;  %544 = vmatpush3.bf16.msra.mxu0 %v594_v27 }
  0x4b   :  { %545 = vmatprep.subr.bf16.mxu0 %v716_v24 }
  0x4d   :  { %517 = vmatpush3.bf16.msra.mxu1 %v586_v18 }
  0x4e   :  { %518 = vmatprep.subr.bf16.mxu1 %v587_v19  ;;  %546 = vmatpush3.bf16.msra.mxu0 %v595_v28 }
  0x4f   :  { %547 = vmatprep.subr.bf16.mxu0 %v716_v24 }
  0x51   :  { %519 = vmatpush3.bf16.msra.mxu1 %v588_v20 }
  0x52   :  { %520 = vmatprep.subr.bf16.mxu1 %v589_v21  ;;  %548 = vmatpush3.bf16.msra.mxu0 %v596_v46 }
  0x53   :  { %549 = vmatprep.subr.bf16.mxu0 %v716_v24 }
  0x55   :  { %521 = vmatpush3.bf16.msra.mxu1 %v590_v22 }
  0x56   :  { %550 = vmatpush3.bf16.msra.mxu0 %v597_v47 }
  0x57   :  { %551 = vmatprep.subr.bf16.mxu0 %v716_v24 }
  0x5a   :  { %552 = vmatpush3.bf16.msra.mxu0 %v598_v48 }
  0xfd   :  { %v157_v36 = vpop.f32.mrf.mxu0 }
  0xfe   :  { %v158_v37 = vadd.f32 %v157_v36, %v92_v34 }
  0xff   :  { %v159_v38 = vpop.f32.mrf.mxu0 }
 0x100   :  { %v160_v39 = vadd.f32 %v159_v38, %v96_v35  ;;  %v164_v40 = vmax.f32 %v158_v37, 0.0 }
 0x101   :  { %v161_v41 = vpop.f32.mrf.mxu0 }
 0x102   :  { %v165_v42 = vmax.f32 %v160_v39, 0.0  ;;  %v166_v45 = vpack.c.bf16 %v164_v40, %v164_v40 }
 0x103   :  { %v162_v43 = vpop.f32.mrf.mxu0 }
 0x104   :  { %v167_v44 = vpack.c.bf16 %v165_v42, %v165_v42 }
 0x106   :  { %335 = vmatprep.mubr.bf16.mxu1 %v167_v44 }
 0x107   :  { %336 = vmatmul.mubr.bf16.vlgmr.msra.gmra.mxu1 %v166_v45 }
 0x1c7   :  { %v522_v49 = vpop.f32.mrf.mxu1 }
 0x1c9   :  { %v523_v51 = vpop.f32.mrf.mxu1 }
 0x1ca   :  { %v524_v52 = vadd.f32 %v523_v51, %v522_v49 }
 0x1cb   :  { %v525_v53 = vpop.f32.mrf.mxu1 }
 0x1cc   :  { %v338_v54 = vadd.f32 %v524_v52, %v480_v50 }
 0x1cd   :  { %v526_v55 = vpop.f32.mrf.mxu1 }
 0x1ce   :  { %v343_v56 = vmax.f32 %v338_v54, 0.0 }
 0x1d0   :  { %v344_v57 = vpack.c.bf16 %v343_v56, %v343_v56 }
 0x1d2   :  { %554 = vmatmul.mubr.bf16.vlgmr.msra.gmra.mxu0 %v344_v57 }
 0x292   :  { %v450_v59 = vpop.f32.mrf.mxu0 }
 0x293   :  { %v451_v60 = vadd.f32 %v497_v58, %v450_v59 }
 0x294   :  { %v555_v61 = vpop.f32.mrf.mxu0 }
 0x295   :  { %v456_v62 = vmax.f32 %v451_v60, 0.0 }
 0x296   :  { %v453_v63 = vpop.f32.mrf.mxu0 }
 0x297   :  { %457 = vst [vmem:[#allocation10] sm:$0xff] %v456_v62 }
 0x298   :  { %v556_v0 = vpop.f32.mrf.mxu0 }
 0x299   :  { %690 = shalt.err (!%p687_p10)
}
 0x29a   :  { %467 = dma.vmem_to_hbm [thread:$0]  %s465_s27, 128, %s790_s7, [#allocation4]  }
 0x29b   :  { %705 = dma.done.wait [#allocation4], 128  }
 0x29c   :  { %706 = vsyncadd [#allocation4], 4294967168 }
 0x29d   :  { %471 = vsyncpa [#allocation3], 1 }
 0x29e   :  { %472 = vsyncpa [#allocation6], 1 }
 0x29f   :  { %473 = vsyncpa [#allocation9], 1 }
 0x2a0   :  { %474 = vsyncpa [#allocation4], 1 }

</bundles_post_ra>
